<compile_context>
chip_gen: v6e
topology: v6e:2x2x1
jax: 0.10.0
libtpu: 0.0.40
codegen_flags: <defaults>
</compile_context>

<pallas_src>
import jax
import jax.numpy as jnp
from jax.experimental import pallas as pl
from jax.experimental.pallas import tpu as pltpu


def _implicit_a_kernel(x_ref, b_ref, o_ref):
    # x_ref: (TM, TL) input tile
    # b_ref: (TM, 1)  per-row (i.e. per (n, c)) implicit bias, lane-broadcast
    # o_ref: (TM, TL)
    o_ref[...] = x_ref[...] + b_ref[...]


def _round_up(v, m):
    return ((v + m - 1) // m) * m


def implicit_a(x_nchw, implicit, *, tm=1024, tl=4096):
    """Equivalent of ImplicitA.forward(x): implicit + x with NCHW broadcast."""
    n, c, h, w = x_nchw.shape
    dtype = x_nchw.dtype
    m = n * c
    l = h * w

    # Pure reshape (contiguous NCHW -> (N*C, H*W)); no transpose, no copies.
    x2 = x_nchw.reshape(m, l)

    # Per-row bias: row index = n*C + c -> bias implicit[0, c, 0, 0].
    b = jnp.broadcast_to(implicit.reshape(1, c), (n, c)).reshape(m, 1).astype(dtype)

    # Align to (8, 128) vreg tiling; pick the largest tile that fits the data.
    m_al = _round_up(m, 8)
    l_al = _round_up(l, 128)
    tm_eff = min(tm, m_al)
    tl_eff = min(tl, l_al)
    m_pad = _round_up(m_al, tm_eff)
    l_pad = _round_up(l_al, tl_eff)

    if (m_pad, l_pad) != (m, l):
        x2 = jnp.pad(x2, ((0, m_pad - m), (0, l_pad - l)))
    if m_pad != m:
        b = jnp.pad(b, ((0, m_pad - m), (0, 0)))

    out = pl.pallas_call(
        _implicit_a_kernel,
        out_shape=jax.ShapeDtypeStruct((m_pad, l_pad), dtype),
        grid_spec=pltpu.PrefetchScalarGridSpec(
            num_scalar_prefetch=0,
            grid=(m_pad // tm_eff, l_pad // tl_eff),
            in_specs=[
                pl.BlockSpec((tm_eff, tl_eff), lambda i, j: (i, j)),
                pl.BlockSpec((tm_eff, 1), lambda i, j: (i, 0)),
            ],
            out_specs=pl.BlockSpec((tm_eff, tl_eff), lambda i, j: (i, j)),
        ),
        compiler_params=pltpu.CompilerParams(
            dimension_semantics=("parallel", "parallel"),
            vmem_limit_bytes=64 << 20,
        ),
    )(x2, b)

    return out[:m, :l].reshape(n, c, h, w)


def _reference(x_nchw, implicit):
    return implicit + x_nchw


if __name__ == "__main__":
    # ImplicitA(channel=4): implicit ~ Normal(0, 0.02), x is (N, C, H, W).
    key = jax.random.PRNGKey(0)
    k_x, k_i = jax.random.split(key)

    n, c, h, w = 2, 4, 16, 16
    x = jax.random.normal(k_x, (n, c, h, w), dtype=jnp.float32)
    implicit = 0.02 * jax.random.normal(k_i, (1, c, 1, 1), dtype=jnp.float32)

    out = implicit_a(x, implicit)
    out = jax.block_until_ready(out)

    ref = _reference(x, implicit)
    assert out.shape == (n, c, h, w), out.shape
    assert jnp.allclose(out, ref, atol=1e-6, rtol=1e-6), float(
        jnp.max(jnp.abs(out - ref)))

    print("KERNEL_OK")
</pallas_src>

<mosaic_0001>
module attributes {stable_mosaic.version = 11 : i64} {
  func.func @_implicit_a_kernel(%arg0: i32, %arg1: i32, %arg2: memref<8x256xf32, #tpu.memory_space<vmem>>, %arg3: memref<8x1xf32, #tpu.memory_space<vmem>>, %arg4: memref<8x256xf32, #tpu.memory_space<vmem>>) attributes {dimension_semantics = [#tpu.dimension_semantics<parallel>, #tpu.dimension_semantics<parallel>], iteration_bounds = array<i64: 1, 1>, scalar_prefetch = 0 : i64, scratch_operands = 0 : i64, tpu.core_type = #tpu.core_type<tc>, window_params = [{transform_indices = @transform_0, window_bounds = array<i64: 8, 256>}, {transform_indices = @transform_1, window_bounds = array<i64: 8, 1>}, {transform_indices = @transform_2, window_bounds = array<i64: 8, 256>}]} {
    %c0 = arith.constant 0 : index
    %c0_0 = arith.constant 0 : index
    %0 = vector.load %arg2[%c0, %c0_0] : memref<8x256xf32, #tpu.memory_space<vmem>>, vector<8x256xf32>
    %c0_1 = arith.constant 0 : index
    %c0_2 = arith.constant 0 : index
    %1 = vector.load %arg3[%c0_1, %c0_2] : memref<8x1xf32, #tpu.memory_space<vmem>>, vector<8x1xf32>
    %2 = vector.broadcast %1 : vector<8x1xf32> to vector<8x256xf32>
    %3 = arith.addf %0, %2 : vector<8x256xf32>
    %c0_3 = arith.constant 0 : index
    %c0_4 = arith.constant 0 : index
    %4 = vector.load %arg4[%c0_3, %c0_4] : memref<8x256xf32, #tpu.memory_space<vmem>>, vector<8x256xf32>
    tpu.vector_store %arg4[%c0_3, %c0_4], %3 {strides = array<i32>} : memref<8x256xf32, #tpu.memory_space<vmem>>, vector<8x256xf32>,
    return
  }
  func.func @transform_0(%arg0: i32, %arg1: i32) -> (i32, i32) {
    %c0_i32 = arith.constant 0 : i32
    return %arg0, %arg1 : i32, i32
  }
  func.func @transform_1(%arg0: i32, %arg1: i32) -> (i32, i32) {
    %c0_i32 = arith.constant 0 : i32
    %c0_i32_0 = arith.constant 0 : i32
    return %arg0, %c0_i32 : i32, i32
  }
  func.func @transform_2(%arg0: i32, %arg1: i32) -> (i32, i32) {
    %c0_i32 = arith.constant 0 : i32
    return %arg0, %arg1 : i32, i32
  }
}

</mosaic_0001>

<bundles_post_ra>
// kernel: tpu_custom_call.1
= control target key start
LH: loop header
LB: loop body
LE: loop exit
PB: predicated region body
PF: predicated region fallthrough
CT: control target
= control target key end

     0   :  { %7 = vsyncpa [#allocation3], 0  ;;  %s126_s0 = inlined_call_operand.hbm [shape: f32[8,256], index: 0, kind: input, shape index: {}]   ;;  %s127_s1 = inlined_call_operand.vmem [shape: f32[8,1], index: 1, kind: input, shape index: {}]   ;;  %s128_s2 = inlined_call_operand.hbm [shape: f32[8,256], index: 2, kind: output, shape index: {}]  }
   0x1   :  { %8 = vsyncpa [#allocation4], 0  ;;  %s99_s9 = smov [#allocation2]  }
   0x2   :  { %s15_s10 = sshll.u32 %s99_s9, 4  ;;  %s16_s10 = int_to_ptr.vmem [resolvable:$true] %s15_s10 }
   0x3   :  { %s63_s11 = scalar_lea.vmem %s16_s10, 256  ;;  %p68_p1 = scmp.lt.s32.totalorder %s16_s10, %s16_s10 }
   0x4   :  { %p64_p0 = scmp.ne.s32.totalorder %s16_s10, %s63_s11  ;;  %p69_p2 = scmp.lt.s32.totalorder %s63_s11, %s63_s11 }
   0x6   :  { %p70_p3 = por %p69_p2, %p68_p1 }
   0x8   :  { %p71_p4 = pnand %p70_p3, %p64_p0 }
   0xa   :  { %74 = shalt.err (!%p71_p4)
}
   0xb   :  { %18 = dma.hbm_to_vmem [thread:$0]  %s126_s0, 256, %s16_s10, [#allocation3]  }
   0xc   :  { %95 = dma.done.wait [#allocation3], 256  }
   0xd   :  { %96 = vsyncadd [#allocation3], 4294967040  ;;  %v100_v0 = vmov 0   ;;  %v26_v1 = vld [vmem:[%s127_s1] sm:$0xff]  ;;  %v25_v3 = vld [vmem:[#allocation2 + $0x8] sm:$0xff]  ;;  %s101_s16 = smov [#allocation5]  }
   0xe   :  { %54 = vset.pattern.permute.xlu0 %v100_v0  ;;  %v24_v2 = vld [vmem:[#allocation2] sm:$0xff]  ;;  %s42_s17 = sshll.u32 %s101_s16, 4  ;;  %s43_s17 = int_to_ptr.vmem [resolvable:$true] %s42_s17 }
   0xf   :  { %29 = vperm.xlu0 %54, %v26_v1   ;;  %s75_s0 = scalar_lea.vmem %s43_s17, 256  ;;  %p80_p6 = scmp.lt.s32.totalorder %s43_s17, %s43_s17 }
  0x10   :  { %p76_p5 = scmp.ne.s32.totalorder %s43_s17, %s75_s0  ;;  %p81_p7 = scmp.lt.s32.totalorder %s75_s0, %s75_s0 }
  0x12   :  { %p82_p8 = por %p81_p7, %p80_p6 }
  0x14   :  { %p83_p9 = pnand %p82_p8, %p76_p5 }
  0x8a   :  { %v30_v4 = vpop.permute.xlu0 %29 }
  0x8b   :  { %v32_v5 = vadd.f32 %v30_v4, %v24_v2  ;;  %v33_v6 = vadd.f32 %v30_v4, %v25_v3 }
  0x8d   :  { %34 = vst [vmem:[#allocation5] sm:$0xff] %v32_v5  ;;  %35 = vst [vmem:[#allocation5 + $0x8] sm:$0xff] %v33_v6 }
  0x8e   :  { %86 = shalt.err (!%p83_p9)
}
  0x8f   :  { %45 = dma.vmem_to_hbm [thread:$0]  %s43_s17, 256, %s128_s2, [#allocation4]  }
  0x90   :  { %97 = dma.done.wait [#allocation4], 256  }
  0x91   :  { %98 = vsyncadd [#allocation4], 4294967040 }
  0x92   :  { %49 = vsyncpa [#allocation3], 1 }
  0x93   :  { %50 = vsyncpa [#allocation4], 1 }

</bundles_post_ra>
